<compile_context>
chip_gen: v7x
topology: tpu7x:2x2x1
jax: 0.10.0
libtpu: 0.0.40
codegen_flags: <defaults>
</compile_context>

<pallas_src>
import functools

import jax
import jax.numpy as jnp
from jax.experimental import pallas as pl
from jax.experimental.pallas import tpu as pltpu


# ---------------------------------------------------------------------------
# Roll-direction probe
# ---------------------------------------------------------------------------
# The stencil/pool kernels build shifted views with pltpu.roll along the
# sublane axis.  Guard against sign-convention ambiguity by probing once on
# device.  NOTE: the result is cached process-wide; this assumes a single TPU
# backend per process (review correctness concern 2).

_ROLL_IS_NUMPY = None  # True  => pltpu.roll(x, s)[q] == x[(q - s) % n]  (np.roll)
                       # False => pltpu.roll(x, s)[q] == x[(q + s) % n]


def _roll_is_numpy_convention():
    global _ROLL_IS_NUMPY
    if _ROLL_IS_NUMPY is None:
        def k(x_ref, o_ref):
            o_ref[...] = pltpu.roll(x_ref[...], shift=1, axis=0)

        x = jnp.broadcast_to(jnp.arange(8, dtype=jnp.float32)[:, None], (8, 128))
        y = pl.pallas_call(k, out_shape=jax.ShapeDtypeStruct((8, 128), jnp.float32))(x)
        _ROLL_IS_NUMPY = bool(y[1, 0] == 0.0)
    return _ROLL_IS_NUMPY


def _roll_shift(delta, size):
    """Static s so pltpu.roll(x, s, axis=0)[q] == x[(q + delta) % size]."""
    return (-delta) % size if _roll_is_numpy_convention() else delta % size


# ---------------------------------------------------------------------------
# Kernels (all operate on padded-flat (P, C) tiles; C on the lane axis).
# The epilogue (shift + relu + border mask) is intentionally computed in f32
# (the MXU accumulation dtype); the downcast to the activation dtype happens at
# the store, so the f32 mask never upcasts a bf16 result tile in HBM.
# ---------------------------------------------------------------------------

def _fused1x1_bn_relu_kernel(x_ref, w_ref, shift_ref, mask_ref,
                             o1_ref, o2_ref, o3_ref):
    # x: (1, TP, Cin)  w: (Cin, C1+C2+C3)  shift: (1, C1+C2+C3)  mask: (TP, 1)
    # One MXU matmul over the concatenated output channels, then three
    # lane-dense stores (one per branch) -- no XLA-level channel slicing.
    y = jnp.dot(x_ref[0], w_ref[...], preferred_element_type=jnp.float32)
    y = jnp.maximum(y + shift_ref[...], 0.0) * mask_ref[...]
    c1 = o1_ref.shape[-1]
    c2 = o2_ref.shape[-1]
    o1_ref[0] = y[:, :c1].astype(o1_ref.dtype)
    o2_ref[0] = y[:, c1:c1 + c2].astype(o2_ref.dtype)
    o3_ref[0] = y[:, c1 + c2:].astype(o3_ref.dtype)


def _conv3x3_bn_relu_kernel(x_ref, w_ref, shift_ref, mask_ref, o_ref,
                            *, roll_shifts):
    # x: (1, P, Cin)  w: (9*Cin, TCout)  shift: (1, TCout)  mask: (P, 1)
    # Tap t of the 3x3 stencil is a sublane roll of the whole padded image;
    # wraparound only corrupts border rows, which the mask zeroes.  The 9 views
    # are stacked along lanes -> one matmul with K = 9*Cin (MXU K stays full,
    # no per-tap f32 accumulator traffic).
    x = x_ref[0].astype(jnp.float32)       # rolls in f32 (16-bit sublane rotate
    taps = []                              # support is not guaranteed)
    for s in roll_shifts:                  # static unroll over the 9 taps
        taps.append(x if s == 0 else pltpu.roll(x, shift=s, axis=0))
    xcat = jnp.concatenate(taps, axis=-1).astype(w_ref.dtype)   # (P, 9*Cin)
    y = jnp.dot(xcat, w_ref[...], preferred_element_type=jnp.float32)
    y = jnp.maximum(y + shift_ref[...], 0.0) * mask_ref[...]
    o_ref[0] = y.astype(o_ref.dtype)


def _maxpool3_conv1x1_bn_relu_kernel(x_ref, w_ref, shift_ref, mask_ref, o_ref,
                                     *, col_shifts, row_shifts):
    # Fused separable 3x3 max pool (stride 1, pad 1) + 1x1 conv + BN + ReLU.
    # Separable pooling: max over column shifts first, then row shifts
    # (4 rolls + 4 maxes instead of 8 + 8).
    m = mask_ref[...]                                          # (P, 1) f32
    x = x_ref[0].astype(jnp.float32)
    x = jnp.where(m > 0.0, x, jnp.float32(-3.0e38))            # borders never win
    xc = x
    for s in col_shifts:
        xc = jnp.maximum(xc, pltpu.roll(x, shift=s, axis=0))
    pooled = xc
    for s in row_shifts:
        pooled = jnp.maximum(pooled, pltpu.roll(xc, shift=s, axis=0))
    pooled = jnp.where(m > 0.0, pooled, 0.0)                   # clamp BEFORE dot
    y = jnp.dot(pooled.astype(w_ref.dtype), w_ref[...],
                preferred_element_type=jnp.float32)
    y = jnp.maximum(y + shift_ref[...], 0.0) * m
    o_ref[0] = y.astype(o_ref.dtype)


# ---------------------------------------------------------------------------
# pallas_call wrappers
# ---------------------------------------------------------------------------

def _spatial_tile(p, cin, cout, itemsize, budget=12 * 1024 * 1024):
    """Largest multiple-of-8 divisor of p whose double-buffered in/out blocks
    plus the resident weights fit in `budget` bytes (v5e default scoped VMEM is
    only 16 MiB; keep headroom so double buffering survives)."""
    weight_bytes = cin * cout * itemsize
    tiles = [p // k for k in range(1, p + 1) if p % k == 0 and (p // k) % 8 == 0]
    for tp in tiles:                                   # descending tile sizes
        if 2 * tp * (cin + cout) * itemsize + weight_bytes <= budget:
            return tp
    return tiles[-1]


def _cout_tile(cout, cap=256):
    """Multiple-of-128 divisor of cout capped at `cap` (MXU N stays full and
    v7x megacore gets a parallel axis); falls back to cout for small branches."""
    if cout > cap:
        for t in range(cap, 127, -128):
            if cout % t == 0:
                return t
    return cout


def fused_conv1x1_bn_relu(xf, w, shift, splits, mask):
    """Three input-sharing 1x1 convs (+folded BN + ReLU) as one matmul with
    three lane-dense outputs.  splits = (C1, C2, C3) static channel counts."""
    n, p, cin = xf.shape
    ctot = w.shape[1]
    assert sum(splits) == ctot
    itemsize = jnp.dtype(xf.dtype).itemsize
    tp = _spatial_tile(p, cin, ctot, itemsize)
    out_shape = tuple(jax.ShapeDtypeStruct((n, p, c), xf.dtype) for c in splits)
    out_specs = tuple(pl.BlockSpec((1, tp, c), lambda i, j: (i, j, 0))
                      for c in splits)
    return pl.pallas_call(
        _fused1x1_bn_relu_kernel,
        out_shape=out_shape,
        grid=(n, p // tp),
        in_specs=[
            pl.BlockSpec((1, tp, cin), lambda i, j: (i, j, 0)),
            pl.BlockSpec((cin, ctot), lambda i, j: (0, 0)),     # resident weights
            pl.BlockSpec((1, ctot), lambda i, j: (0, 0)),
            pl.BlockSpec((tp, 1), lambda i, j: (j, 0)),
        ],
        out_specs=out_specs,
        compiler_params=pltpu.CompilerParams(
            dimension_semantics=("parallel", "parallel")),
    )(xf, w, shift, mask)


def conv3x3_bn_relu(xf, w, shift, mask, wrow):
    """3x3 conv (pad 1) + folded BN + ReLU on a padded-flat (N, P, Cin) input.
    w is the tap-stacked (9*Cin, Cout) matmul operand."""
    n, p, cin = xf.shape
    ktot, cout = w.shape
    assert ktot == 9 * cin
    tc = _cout_tile(cout)
    roll_shifts = tuple(_roll_shift((kh - 1) * wrow + (kw - 1), p)
                        for kh in range(3) for kw in range(3))
    kernel = functools.partial(_conv3x3_bn_relu_kernel, roll_shifts=roll_shifts)
    return pl.pallas_call(
        kernel,
        out_shape=jax.ShapeDtypeStruct((n, p, cout), xf.dtype),
        grid=(n, cout // tc),
        in_specs=[
            # Input block is independent of the Cout index -> stays resident
            # across the inner (fast) grid axis.
            pl.BlockSpec((1, p, cin), lambda i, j: (i, 0, 0)),
            pl.BlockSpec((9 * cin, tc), lambda i, j: (0, j)),
            pl.BlockSpec((1, tc), lambda i, j: (0, j)),
            pl.BlockSpec((p, 1), lambda i, j: (0, 0)),
        ],
        out_specs=pl.BlockSpec((1, p, tc), lambda i, j: (i, 0, j)),
        compiler_params=pltpu.CompilerParams(
            dimension_semantics=("parallel", "parallel")),
    )(xf, w, shift, mask)


def maxpool3_conv1x1_bn_relu(xf, w, shift, mask, wrow):
    """3x3 max pool (stride 1, pad 1) + 1x1 conv + folded BN + ReLU, fused."""
    n, p, cin = xf.shape
    cout = w.shape[1]
    tc = _cout_tile(cout)
    col_shifts = tuple(_roll_shift(d, p) for d in (-1, 1))
    row_shifts = tuple(_roll_shift(d * wrow, p) for d in (-1, 1))
    kernel = functools.partial(_maxpool3_conv1x1_bn_relu_kernel,
                               col_shifts=col_shifts, row_shifts=row_shifts)
    return pl.pallas_call(
        kernel,
        out_shape=jax.ShapeDtypeStruct((n, p, cout), xf.dtype),
        grid=(n, cout // tc),
        in_specs=[
            pl.BlockSpec((1, p, cin), lambda i, j: (i, 0, 0)),
            pl.BlockSpec((cin, tc), lambda i, j: (0, j)),
            pl.BlockSpec((1, tc), lambda i, j: (0, j)),
            pl.BlockSpec((p, 1), lambda i, j: (0, 0)),
        ],
        out_specs=pl.BlockSpec((1, p, tc), lambda i, j: (i, 0, j)),
        compiler_params=pltpu.CompilerParams(
            dimension_semantics=("parallel", "parallel")),
    )(xf, w, shift, mask)


# ---------------------------------------------------------------------------
# Layout / parameter helpers
# ---------------------------------------------------------------------------

def _padded_flat_geometry(h, w):
    """Row length and row count of the padded-flat layout (P = rows*wrow, P%8==0)."""
    wrow = w + 2
    rows = h + 2
    while (rows * wrow) % 8:
        rows += 1
    return wrow, rows


def _to_padded_flat(x_nhwc, wrow, rows):
    n, h, w, c = x_nhwc.shape
    xp = jnp.pad(x_nhwc, ((0, 0), (1, rows - h - 1), (1, 1), (0, 0)))
    return xp.reshape(n, rows * wrow, c)


def _interior_mask(h, w, wrow, rows):
    q = jnp.arange(rows * wrow, dtype=jnp.int32)
    r, c = q // wrow, q % wrow
    m = (r >= 1) & (r <= h) & (c >= 1) & (c <= w)
    return m.astype(jnp.float32).reshape(rows * wrow, 1)


def make_inception_params(key, in_planes, n1x1, n3x3red, n3x3, n5x5red, n5x5,
                          pool_planes):
    """Raw (PyTorch-like) params: conv weight (HWIO), bias, BN gamma/beta/mean/var."""
    defs = [
        ("b1", 1, in_planes, n1x1),
        ("b2a", 1, in_planes, n3x3red),
        ("b2b", 3, n3x3red, n3x3),
        ("b3a", 1, in_planes, n5x5red),
        ("b3b", 3, n5x5red, n5x5),
        ("b3c", 3, n5x5, n5x5),
        ("b4", 1, in_planes, pool_planes),
    ]
    params = {}
    for name, k, cin, cout in defs:
        key, wk, bk, gk, bek, mk, vk = jax.random.split(key, 7)
        params[name] = (
            jax.random.normal(wk, (k, k, cin, cout), jnp.float32) * 0.1,   # HWIO
            jax.random.normal(bk, (cout,), jnp.float32) * 0.1,             # conv bias
            1.0 + 0.1 * jax.random.normal(gk, (cout,), jnp.float32),       # gamma
            0.1 * jax.random.normal(bek, (cout,), jnp.float32),            # beta
            0.1 * jax.random.normal(mk, (cout,), jnp.float32),             # running mean
            1.0 + 0.1 * jnp.abs(jax.random.normal(vk, (cout,), jnp.float32)),  # var
        )
    return params


def fold_inception_params(raw, eps=1e-5, dtype=jnp.float32):
    """Fold inference-mode BN into the conv weights; stack 3x3 taps into a
    (9*Cin, Cout) matmul operand; fuse (hoist) the three input-sharing 1x1
    convs into one weight/shift.  `dtype` is the activation/weight compute
    dtype (bf16 on v6e/v7x); shifts stay f32 (f32 epilogue)."""
    def fold(name):
        w, b, gamma, beta, mean, var = raw[name]
        scale = gamma / jnp.sqrt(var + eps)
        shift = (beta + (b - mean) * scale).reshape(1, -1).astype(jnp.float32)
        k, _, cin, cout = w.shape
        wf = (w * scale).reshape(k * k * cin, cout).astype(dtype)
        return wf, shift

    b1, b2a, b3a = fold("b1"), fold("b2a"), fold("b3a")
    return {
        "fused1x1": (jnp.concatenate([b1[0], b2a[0], b3a[0]], axis=1),
                     jnp.concatenate([b1[1], b2a[1], b3a[1]], axis=1)),
        "b2b": fold("b2b"),
        "b3b": fold("b3b"),
        "b3c": fold("b3c"),
        "b4": fold("b4"),
    }


# ---------------------------------------------------------------------------
# Full Inception forward (Pallas)
# ---------------------------------------------------------------------------

def inception_pallas(x_nchw, fp, dtype=jnp.float32):
    x = jnp.transpose(x_nchw, (0, 2, 3, 1)).astype(dtype)    # NCHW -> NHWC
    n, h, w, _ = x.shape
    wrow, rows = _padded_flat_geometry(h, w)
    mask = _interior_mask(h, w, wrow, rows)                  # (P, 1) f32
    xf = _to_padded_flat(x, wrow, rows)                      # (N, P, Cin), zero border

    # Fused 1x1 convs over the shared input: b1 | b2-reduce | b3-reduce.
    wcat, scat = fp["fused1x1"]
    c2 = fp["b2b"][0].shape[0] // 9          # n3x3red   (static from shapes)
    c3 = fp["b3b"][0].shape[0] // 9          # n5x5red
    c1 = wcat.shape[1] - c2 - c3             # n1x1
    y1, t2, t3 = fused_conv1x1_bn_relu(xf, wcat, scat, (c1, c2, c3), mask)

    # Branch 2: 1x1 -> 3x3.
    y2 = conv3x3_bn_relu(t2, *fp["b2b"], mask, wrow)
    # Branch 3: 1x1 -> 3x3 -> 3x3.
    t = conv3x3_bn_relu(t3, *fp["b3b"], mask, wrow)
    y3 = conv3x3_bn_relu(t, *fp["b3c"], mask, wrow)
    # Branch 4: 3x3 max pool (stride 1, pad 1) -> 1x1 conv, single fused kernel.
    y4 = maxpool3_conv1x1_bn_relu(xf, *fp["b4"], mask, wrow)

    # TODO(synk): for chained Inception blocks keep activations in padded-flat
    # NHWC and write branch outputs into lane slices of one shared buffer via
    # input_output_aliases; here we convert back to NCHW to match the module.
    y = jnp.concatenate([y1, y2, y3, y4], axis=-1)
    y = y.reshape(n, rows, wrow, y.shape[-1])[:, 1:h + 1, 1:w + 1, :]
    return jnp.transpose(y, (0, 3, 1, 2))


# ---------------------------------------------------------------------------
# Pure-JAX reference (unfused BN, for correctness check)
# ---------------------------------------------------------------------------

def _ref_conv_bn_relu(x, p, eps=1e-5):
    w, b, gamma, beta, mean, var = p
    pad = (w.shape[0] - 1) // 2
    y = jax.lax.conv_general_dilated(
        x, w, window_strides=(1, 1), padding=[(pad, pad), (pad, pad)],
        dimension_numbers=("NHWC", "HWIO", "NHWC"),
        precision=jax.lax.Precision.HIGHEST)
    y = y + b
    y = (y - mean) * (gamma / jnp.sqrt(var + eps)) + beta
    return jnp.maximum(y, 0.0)


def _ref_maxpool3(x):
    return jax.lax.reduce_window(
        x, -jnp.inf, jax.lax.max, (1, 3, 3, 1), (1, 1, 1, 1),
        padding=[(0, 0), (1, 1), (1, 1), (0, 0)])


def inception_ref(x_nchw, raw):
    x = jnp.transpose(x_nchw, (0, 2, 3, 1))
    y1 = _ref_conv_bn_relu(x, raw["b1"])
    y2 = _ref_conv_bn_relu(_ref_conv_bn_relu(x, raw["b2a"]), raw["b2b"])
    t = _ref_conv_bn_relu(_ref_conv_bn_relu(x, raw["b3a"]), raw["b3b"])
    y3 = _ref_conv_bn_relu(t, raw["b3c"])
    y4 = _ref_conv_bn_relu(_ref_maxpool3(x), raw["b4"])
    y = jnp.concatenate([y1, y2, y3, y4], axis=-1)
    return jnp.transpose(y, (0, 3, 1, 2))


# ---------------------------------------------------------------------------

if __name__ == "__main__":
    key = jax.random.PRNGKey(0)
    pkey, xkey = jax.random.split(key)

    # Lane-aligned channel counts (128 = one TPU lane tile).  Real GoogLeNet
    # blocks use 16..832 channels; the kernels accept any counts, but aligned
    # ones keep every store / channel split lane-dense (perf review item 2).
    in_planes = n1x1 = n3x3red = n3x3 = n5x5red = n5x5 = pool_planes = 128

    raw = make_inception_params(pkey, in_planes, n1x1, n3x3red, n3x3,
                                n5x5red, n5x5, pool_planes)

    # NCHW input, like the PyTorch module.
    x = jax.random.normal(xkey, (2, in_planes, 16, 16), jnp.float32)

    _roll_is_numpy_convention()   # resolve roll direction once, before tracing

    ref = jax.block_until_ready(jax.jit(inception_ref)(x, raw))
    scale = float(jnp.max(jnp.abs(ref)))

    # f32 path: correctness vs. the unfused reference.
    fp32 = fold_inception_params(raw, dtype=jnp.float32)
    fwd32 = jax.jit(functools.partial(inception_pallas, dtype=jnp.float32))
    out32 = jax.block_until_ready(fwd32(x, fp32))
    assert out32.shape == (2, n1x1 + n3x3 + n5x5 + pool_planes, 16, 16), out32.shape
    err32 = float(jnp.max(jnp.abs(out32 - ref)))
    assert err32 < 5e-3 * scale + 2e-2, f"f32 max abs err {err32} (scale {scale})"

    # bf16 path (v6e/v7x): bf16 activations/weights, f32 MXU accumulation.
    fpbf = fold_inception_params(raw, dtype=jnp.bfloat16)
    fwdbf = jax.jit(functools.partial(inception_pallas, dtype=jnp.bfloat16))
    outbf = jax.block_until_ready(fwdbf(x, fpbf)).astype(jnp.float32)
    errbf = float(jnp.max(jnp.abs(outbf - ref)))
    assert errbf < 4e-2 * scale + 1e-1, f"bf16 max abs err {errbf} (scale {scale})"

    print("KERNEL_OK")
</pallas_src>

<mosaic_0001>
module attributes {stable_mosaic.version = 11 : i64} {
  func.func @k(%arg0: memref<8x128xf32, #tpu.memory_space<vmem>>, %arg1: memref<8x128xf32, #tpu.memory_space<vmem>>) attributes {dimension_semantics = [], scalar_prefetch = 0 : i64, scratch_operands = 0 : i64, tpu.core_type = #tpu.core_type<tc>} {
    %c0 = arith.constant 0 : index
    %c0_0 = arith.constant 0 : index
    %0 = vector.load %arg0[%c0, %c0_0] : memref<8x128xf32, #tpu.memory_space<vmem>>, vector<8x128xf32>
    %c1_i32 = arith.constant 1 : i32
    %1 = tpu.dynamic_rotate %0 by %c1_i32 dim 0 : vector<8x128xf32>, i32 -> vector<8x128xf32>
    %c0_1 = arith.constant 0 : index
    %c0_2 = arith.constant 0 : index
    %2 = vector.load %arg1[%c0_1, %c0_2] : memref<8x128xf32, #tpu.memory_space<vmem>>, vector<8x128xf32>
    tpu.vector_store %arg1[%c0_1, %c0_2], %1 {strides = array<i32>} : memref<8x128xf32, #tpu.memory_space<vmem>>, vector<8x128xf32>,
    return
  }
}

</mosaic_0001>

<bundles_post_ra>
// kernel: tpu_custom_call.1
= control target key start
LH: loop header
LB: loop body
LE: loop exit
PB: predicated region body
PF: predicated region fallthrough
CT: control target
= control target key end

     0   :  { %6 = vsyncpa [#allocation3], 0  ;;  %s125_s0 = inlined_call_operand.hbm [shape: f32[8,128], index: 0, kind: input, shape index: {}]   ;;  %s126_s1 = inlined_call_operand.hbm [shape: f32[8,128], index: 1, kind: output, shape index: {}]  }
   0x1   :  { %7 = vsyncpa [#allocation4], 0  ;;  %s89_s6 = smov [#allocation2]   ;;  %s41_s10 = scalar_lea.hbm %s125_s0, 128 }
   0x2   :  { %s14_s7 = sshll.u32 %s89_s6, 4  ;;  %p42_p0 = scmp.ne.s32.totalorder %s125_s0, %s41_s10  ;;  %s15_s7 = int_to_ptr.vmem [resolvable:$true] %s14_s7 }
   0x3   :  { %p45_p1 = scmp.lt.u32.totalorder %s41_s10, %s125_s0 }
   0x5   :  { %p47_p2 = pnand %p45_p1, %p42_p0 }
   0x7   :  { %50 = shalt.err (!%p47_p2)
}
   0x8   :  { %s51_s15 = scalar_lea.vmem %s15_s7, 128  ;;  %p56_p4 = scmp.lt.s32.totalorder %s15_s7, %s15_s7 }
   0x9   :  { %p52_p3 = scmp.ne.s32.totalorder %s15_s7, %s51_s15  ;;  %p57_p5 = scmp.lt.s32.totalorder %s51_s15, %s51_s15 }
   0xb   :  { %p58_p6 = por %p57_p5, %p56_p4 }
   0xd   :  { %p59_p7 = pnand %p58_p6, %p52_p3 }
   0xf   :  { %62 = shalt.err (!%p59_p7)
}
  0x10   :  { %17 = dma.hbm_to_vmem [thread:$0]  %s125_s0, 128, %s15_s7, [#allocation3]  }
  0x11   :  { %85 = dma.done.wait [#allocation3], 128  }
  0x12   :  { %86 = vsyncadd [#allocation3], 4294967168  ;;  %s90_s18 = smov [#allocation5]   ;;  %v21_v0 = vld [vmem:[#allocation2] sm:$0xff] }
  0x13   :  { %s30_s19 = sshll.u32 %s90_s18, 4  ;;  %v22_v1 = vrot.slane %v21_v0, 7  ;;  %s31_s19 = int_to_ptr.vmem [resolvable:$true] %s30_s19 }
  0x14   :  { %s63_s20 = scalar_lea.vmem %s31_s19, 128  ;;  %p68_p9 = scmp.lt.s32.totalorder %s31_s19, %s31_s19 }
  0x15   :  { %23 = vst [vmem:[#allocation5] sm:$0xff] %v22_v1  ;;  %p64_p8 = scmp.ne.s32.totalorder %s31_s19, %s63_s20  ;;  %p69_p10 = scmp.lt.s32.totalorder %s63_s20, %s63_s20 }
  0x17   :  { %p70_p11 = por %p69_p10, %p68_p9 }
  0x19   :  { %p71_p12 = pnand %p70_p11, %p64_p8 }
  0x1b   :  { %74 = shalt.err (!%p71_p12)
}
  0x1c   :  { %s75_s23 = scalar_lea.hbm %s126_s1, 128 }
  0x1d   :  { %p76_p13 = scmp.ne.s32.totalorder %s126_s1, %s75_s23  ;;  %p79_p0 = scmp.lt.u32.totalorder %s75_s23, %s126_s1 }
  0x1f   :  { %p81_p1 = pnand %p79_p0, %p76_p13 }
  0x21   :  { %84 = shalt.err (!%p81_p1)
}
  0x22   :  { %33 = dma.vmem_to_hbm [thread:$0]  %s31_s19, 128, %s126_s1, [#allocation4]  }
  0x23   :  { %87 = dma.done.wait [#allocation4], 128  }
  0x24   :  { %88 = vsyncadd [#allocation4], 4294967168 }
  0x25   :  { %37 = vsyncpa [#allocation3], 1 }
  0x26   :  { %38 = vsyncpa [#allocation4], 1 }

</bundles_post_ra>
